<compile_context>
chip_gen: v7x
topology: tpu7x:2x2x1
jax: 0.10.0
libtpu: 0.0.40
codegen_flags: <defaults>
</compile_context>

<pallas_src>
import functools

import jax
import jax.numpy as jnp
from jax.experimental import pallas as pl
from jax.experimental.pallas import tpu as pltpu


# --------------------------------------------------------------------------- #
# Pallas kernel
# --------------------------------------------------------------------------- #

def _upsample_conv_kernel(xp_ref, w_ref, b_ref, o_ref, *, ta, w, c):
    """One (batch, row-tile) step of nearest-2x-upsample + 3x3 conv + bias + ReLU.

    xp_ref : (H+2, W+2, C)      bf16  zero-padded input image (resident per batch)
    w_ref  : (9*C, 4*Cout)      bf16  merged folded weights, K = (dr, dc, c_in),
                                      N = (pi*2 + pj)*Cout + c_out
    b_ref  : (1, 4*Cout)        f32   bias tiled across the 4 parities
    o_ref  : (ta, W, 4*Cout)    f32   parity-packed conv output
    """
    a0 = pl.multiple_of(pl.program_id(1) * ta, ta)   # first source row of tile

    # 9 unique halo taps (rows a0+{0,1,2} x cols {0,1,2}), sliced once.
    taps = [xp_ref[pl.ds(a0 + dr, ta), pl.ds(dc, w), :]
            for dr in range(3) for dc in range(3)]
    # (ta, W, 9*C) -> (ta*W, 9*C); free relayout when W is a multiple of 8.
    a_mat = jnp.concatenate(taps, axis=-1).reshape(ta * w, 9 * c)

    # Single MXU pass: all four output parities share one lane-dense RHS.
    acc = jnp.dot(a_mat, w_ref[...], preferred_element_type=jnp.float32)
    acc = jnp.maximum(acc + b_ref[...], 0.0)          # fused bias + ReLU epilogue
    o_ref[...] = acc.reshape(o_ref.shape)


# --------------------------------------------------------------------------- #
# Wrapper
# --------------------------------------------------------------------------- #

def _row_tile(h, w, n, target_rows=512):
    """Largest divisor of H keeping M = ta*W modest and n*(H//ta) >= 2 (megacore)."""
    best = 1
    for cand in range(1, h + 1):
        if h % cand != 0:
            continue
        if cand * w > target_rows:
            continue
        if n * (h // cand) < 2:          # keep both TensorCores busy on v7x
            continue
        best = cand
    return best


def prepare_params(wgt, b):
    """One-time weight folding: upsample-2x + 3x3 conv -> one (9*Cin, 4*Cout) matmul.

    wgt: (Cout, Cin, 3, 3) torch layout, b: (Cout,).
    Returns weff (9*Cin, 4*Cout) bf16 and bias (1, 4*Cout) f32.
    Zeros are placed where a halo tap does not contribute to a given parity.
    """
    cout, cin = int(wgt.shape[0]), int(wgt.shape[1])
    w_t = jnp.transpose(wgt, (2, 3, 1, 0)).astype(jnp.float32)        # (3,3,Cin,Cout)
    # s3[p, k, d] = 1 iff 3x3 tap k (along one axis) reads padded-window offset d
    # for output parity p after folding the nearest-2x upsample into the conv.
    s3 = jnp.array([[[1., 0., 0.], [0., 1., 0.], [0., 1., 0.]],
                    [[0., 1., 0.], [0., 1., 0.], [0., 0., 1.]]], jnp.float32)  # (2,3,3)
    weff = jnp.einsum('phr,qws,hwco->rscpqo', s3, s3, w_t)            # (3,3,Cin,2,2,Cout)
    weff = weff.reshape(9 * cin, 4 * cout).astype(jnp.bfloat16)
    bias = jnp.tile(b.astype(jnp.float32).reshape(1, cout), (1, 4))   # (1, 4*Cout)
    return weff, bias


def upsampling_forward(x, r, weff, bias):
    """UpSampling.forward: nearest x2 -> Conv2d(C, C//2, 3,1,1) -> ReLU -> cat([., r], 1).

    x: (N, C, H, W) f32 NCHW, r: (N, C//2, 2H, 2W) f32 -> (N, C, 2H, 2W) f32.
    """
    n, c, h, w = x.shape
    cout = bias.shape[-1] // 4
    ta = _row_tile(h, w, n)               # ta=1 fallback is correct (may mask stores)

    # NHWC (lane = channels), bf16 MXU operands, zero pad once for conv padding=1.
    xh = jnp.transpose(x, (0, 2, 3, 1)).astype(jnp.bfloat16)
    xp = jnp.pad(xh, ((0, 0), (1, 1), (1, 1), (0, 0)))

    # Explicit VMEM budget: double-buffered image + weights + output tile (+ slack).
    img_b = (h + 2) * (w + 2) * c * 2
    wgt_b = 9 * c * 4 * cout * 2 + 4 * cout * 4
    out_b = ta * w * 4 * cout * 4
    vmem_limit = int(min(64 << 20,
                         max(32 << 20, 2 * (img_b + wgt_b + out_b) + (4 << 20))))

    kernel = functools.partial(_upsample_conv_kernel, ta=ta, w=w, c=c)
    conv_pack = pl.pallas_call(
        kernel,
        out_shape=jax.ShapeDtypeStruct((n, h, w, 4 * cout), jnp.float32),
        grid_spec=pltpu.PrefetchScalarGridSpec(
            num_scalar_prefetch=0,
            grid=(n, h // ta),
            in_specs=[
                # Full padded image per batch element; index constant over the
                # row-tile axis -> block stays resident in VMEM.
                pl.BlockSpec((None, h + 2, w + 2, c), lambda nb, tb: (nb, 0, 0, 0)),
                pl.BlockSpec((9 * c, 4 * cout), lambda nb, tb: (0, 0)),
                pl.BlockSpec((1, 4 * cout), lambda nb, tb: (0, 0)),
            ],
            out_specs=pl.BlockSpec((None, ta, w, 4 * cout),
                                   lambda nb, tb: (nb, tb, 0, 0)),
        ),
        compiler_params=pltpu.CompilerParams(
            dimension_semantics=("parallel", "parallel"),
            vmem_limit_bytes=vmem_limit),
    )(xp, weff, bias)

    # Un-interleave the parity packing and return NCHW.  This is the one transpose
    # the NCHW interface forces anyway; the skip-channel concat rides along.
    conv = conv_pack.reshape(n, h, w, 2, 2, cout)
    conv = jnp.transpose(conv, (0, 5, 1, 3, 2, 4)).reshape(n, cout, 2 * h, 2 * w)
    return jnp.concatenate([conv, r], axis=1)


# --------------------------------------------------------------------------- #
# Test
# --------------------------------------------------------------------------- #

if __name__ == "__main__":
    key = jax.random.PRNGKey(0)
    kx, kr, kw, kb = jax.random.split(key, 4)

    N, C, H, W = 2, 128, 8, 8                        # UpSampling(C=128)
    Cout = C // 2

    x = jax.random.normal(kx, (N, C, H, W), jnp.float32)
    r = jax.random.normal(kr, (N, Cout, 2 * H, 2 * W), jnp.float32)
    bound = 1.0 / (C * 9) ** 0.5                     # nn.Conv2d default init range
    wgt = jax.random.uniform(kw, (Cout, C, 3, 3), jnp.float32, -bound, bound)
    bvec = jax.random.uniform(kb, (Cout,), jnp.float32, -bound, bound)

    weff, bias = prepare_params(wgt, bvec)           # one-time weight folding
    fwd = jax.jit(upsampling_forward)
    out = jax.block_until_ready(fwd(x, r, weff, bias))

    assert out.shape == (N, C, 2 * H, 2 * W), out.shape
    assert out.dtype == jnp.float32

    # Pure-JAX f32 reference of the PyTorch module (bf16 operands -> loose atol).
    xu = jnp.repeat(jnp.repeat(x, 2, axis=2), 2, axis=3)
    ref = jax.lax.conv_general_dilated(
        xu, wgt, window_strides=(1, 1), padding=((1, 1), (1, 1)),
        dimension_numbers=("NCHW", "OIHW", "NCHW"))
    ref = jnp.concatenate([jax.nn.relu(ref + bvec.reshape(1, -1, 1, 1)), r], axis=1)

    err = float(jnp.max(jnp.abs(out - ref)))
    assert err < 5e-2, f"max abs err vs f32 reference: {err}"
    print("KERNEL_OK")
</pallas_src>

<mosaic_0001>
module attributes {stable_mosaic.version = 11 : i64} {
  func.func @_upsample_conv_kernel(%arg0: i32, %arg1: i32, %arg2: memref<1x10x10x128xbf16, #tpu.memory_space<vmem>>, %arg3: memref<1152x256xbf16, #tpu.memory_space<vmem>>, %arg4: memref<1x256xf32, #tpu.memory_space<vmem>>, %arg5: memref<1x8x8x256xf32, #tpu.memory_space<vmem>>) attributes {dimension_semantics = [#tpu.dimension_semantics<parallel>, #tpu.dimension_semantics<parallel>], iteration_bounds = array<i64: 2, 1>, scalar_prefetch = 0 : i64, scratch_operands = 0 : i64, tpu.core_type = #tpu.core_type<tc>, window_params = [{transform_indices = @transform_0, window_bounds = array<i64: 1, 10, 10, 128>}, {pipeline_mode = #tpu.pipeline_mode<synchronous>, transform_indices = @transform_1, window_bounds = array<i64: 1152, 256>}, {pipeline_mode = #tpu.pipeline_mode<synchronous>, transform_indices = @transform_2, window_bounds = array<i64: 1, 256>}, {transform_indices = @transform_3, window_bounds = array<i64: 1, 8, 8, 256>}]} {
    %c8_i32 = arith.constant 8 : i32
    %0 = arith.muli %arg1, %c8_i32 : i32
    %1 = tpu.assume_multiple %0, 8 : i32
    %c0_i32 = arith.constant 0 : i32
    %2 = arith.addi %1, %c0_i32 : i32
    %c0 = arith.constant 0 : index
    %3 = arith.index_cast %2 : i32 to index
    %c0_0 = arith.constant 0 : index
    %c0_1 = arith.constant 0 : index
    %4 = vector.load %arg2[%c0, %3, %c0_0, %c0_1] : memref<1x10x10x128xbf16, #tpu.memory_space<vmem>>, vector<1x8x8x128xbf16>
    %5 = vector.shape_cast %4 : vector<1x8x8x128xbf16> to vector<8x8x128xbf16>
    %c0_i32_2 = arith.constant 0 : i32
    %6 = arith.addi %1, %c0_i32_2 : i32
    %c0_3 = arith.constant 0 : index
    %7 = arith.index_cast %6 : i32 to index
    %c1 = arith.constant 1 : index
    %c0_4 = arith.constant 0 : index
    %8 = vector.load %arg2[%c0_3, %7, %c1, %c0_4] : memref<1x10x10x128xbf16, #tpu.memory_space<vmem>>, vector<1x8x8x128xbf16>
    %9 = vector.shape_cast %8 : vector<1x8x8x128xbf16> to vector<8x8x128xbf16>
    %c0_i32_5 = arith.constant 0 : i32
    %10 = arith.addi %1, %c0_i32_5 : i32
    %c0_6 = arith.constant 0 : index
    %11 = arith.index_cast %10 : i32 to index
    %c2 = arith.constant 2 : index
    %c0_7 = arith.constant 0 : index
    %12 = vector.load %arg2[%c0_6, %11, %c2, %c0_7] : memref<1x10x10x128xbf16, #tpu.memory_space<vmem>>, vector<1x8x8x128xbf16>
    %13 = vector.shape_cast %12 : vector<1x8x8x128xbf16> to vector<8x8x128xbf16>
    %c1_i32 = arith.constant 1 : i32
    %14 = arith.addi %1, %c1_i32 : i32
    %c0_8 = arith.constant 0 : index
    %15 = arith.index_cast %14 : i32 to index
    %c0_9 = arith.constant 0 : index
    %c0_10 = arith.constant 0 : index
    %16 = vector.load %arg2[%c0_8, %15, %c0_9, %c0_10] : memref<1x10x10x128xbf16, #tpu.memory_space<vmem>>, vector<1x8x8x128xbf16>
    %17 = vector.shape_cast %16 : vector<1x8x8x128xbf16> to vector<8x8x128xbf16>
    %c1_i32_11 = arith.constant 1 : i32
    %18 = arith.addi %1, %c1_i32_11 : i32
    %c0_12 = arith.constant 0 : index
    %19 = arith.index_cast %18 : i32 to index
    %c1_13 = arith.constant 1 : index
    %c0_14 = arith.constant 0 : index
    %20 = vector.load %arg2[%c0_12, %19, %c1_13, %c0_14] : memref<1x10x10x128xbf16, #tpu.memory_space<vmem>>, vector<1x8x8x128xbf16>
    %21 = vector.shape_cast %20 : vector<1x8x8x128xbf16> to vector<8x8x128xbf16>
    %c1_i32_15 = arith.constant 1 : i32
    %22 = arith.addi %1, %c1_i32_15 : i32
    %c0_16 = arith.constant 0 : index
    %23 = arith.index_cast %22 : i32 to index
    %c2_17 = arith.constant 2 : index
    %c0_18 = arith.constant 0 : index
    %24 = vector.load %arg2[%c0_16, %23, %c2_17, %c0_18] : memref<1x10x10x128xbf16, #tpu.memory_space<vmem>>, vector<1x8x8x128xbf16>
    %25 = vector.shape_cast %24 : vector<1x8x8x128xbf16> to vector<8x8x128xbf16>
    %c2_i32 = arith.constant 2 : i32
    %26 = arith.addi %1, %c2_i32 : i32
    %c0_19 = arith.constant 0 : index
    %27 = arith.index_cast %26 : i32 to index
    %c0_20 = arith.constant 0 : index
    %c0_21 = arith.constant 0 : index
    %28 = vector.load %arg2[%c0_19, %27, %c0_20, %c0_21] : memref<1x10x10x128xbf16, #tpu.memory_space<vmem>>, vector<1x8x8x128xbf16>
    %29 = vector.shape_cast %28 : vector<1x8x8x128xbf16> to vector<8x8x128xbf16>
    %c2_i32_22 = arith.constant 2 : i32
    %30 = arith.addi %1, %c2_i32_22 : i32
    %c0_23 = arith.constant 0 : index
    %31 = arith.index_cast %30 : i32 to index
    %c1_24 = arith.constant 1 : index
    %c0_25 = arith.constant 0 : index
    %32 = vector.load %arg2[%c0_23, %31, %c1_24, %c0_25] : memref<1x10x10x128xbf16, #tpu.memory_space<vmem>>, vector<1x8x8x128xbf16>
    %33 = vector.shape_cast %32 : vector<1x8x8x128xbf16> to vector<8x8x128xbf16>
    %c2_i32_26 = arith.constant 2 : i32
    %34 = arith.addi %1, %c2_i32_26 : i32
    %c0_27 = arith.constant 0 : index
    %35 = arith.index_cast %34 : i32 to index
    %c2_28 = arith.constant 2 : index
    %c0_29 = arith.constant 0 : index
    %36 = vector.load %arg2[%c0_27, %35, %c2_28, %c0_29] : memref<1x10x10x128xbf16, #tpu.memory_space<vmem>>, vector<1x8x8x128xbf16>
    %37 = vector.shape_cast %36 : vector<1x8x8x128xbf16> to vector<8x8x128xbf16>
    %38 = tpu.concatenate %5, %9, %13, %17, %21, %25, %29, %33, %37 in 2 : vector<8x8x128xbf16>, vector<8x8x128xbf16>, vector<8x8x128xbf16>, vector<8x8x128xbf16>, vector<8x8x128xbf16>, vector<8x8x128xbf16>, vector<8x8x128xbf16>, vector<8x8x128xbf16>, vector<8x8x128xbf16> -> vector<8x8x1152xbf16>
    %39 = vector.shape_cast %38 : vector<8x8x1152xbf16> to vector<64x1152xbf16>
    %c0_30 = arith.constant 0 : index
    %c0_31 = arith.constant 0 : index
    %40 = vector.load %arg3[%c0_30, %c0_31] : memref<1152x256xbf16, #tpu.memory_space<vmem>>, vector<1152x256xbf16>
    %cst = arith.constant dense<0.000000e+00> : vector<64x256xf32>
    %41 = tpu.matmul %39, %40, %cst {dimension_numbers = #tpu.dot_dimension_numbers<[1], [0], [0], [1], [0, 0, 1, 1], [], []>} : vector<64x1152xbf16>, vector<1152x256xbf16>, vector<64x256xf32> -> vector<64x256xf32>
    %c0_32 = arith.constant 0 : index
    %c0_33 = arith.constant 0 : index
    %42 = vector.load %arg4[%c0_32, %c0_33] : memref<1x256xf32, #tpu.memory_space<vmem>>, vector<1x256xf32>
    %43 = vector.broadcast %42 : vector<1x256xf32> to vector<64x256xf32>
    %44 = arith.addf %41, %43 : vector<64x256xf32>
    %cst_34 = arith.constant 0.000000e+00 : f32
    %45 = vector.broadcast %cst_34 : f32 to vector<64x256xf32>
    %46 = arith.maximumf %44, %45 : vector<64x256xf32>
    %47 = vector.shape_cast %46 : vector<64x256xf32> to vector<8x8x256xf32>
    %c0_35 = arith.constant 0 : index
    %c0_36 = arith.constant 0 : index
    %c0_37 = arith.constant 0 : index
    %c0_38 = arith.constant 0 : index
    %48 = vector.load %arg5[%c0_35, %c0_36, %c0_37, %c0_38] : memref<1x8x8x256xf32, #tpu.memory_space<vmem>>, vector<1x8x8x256xf32>
    %49 = vector.shape_cast %48 : vector<1x8x8x256xf32> to vector<8x8x256xf32>
    %50 = vector.shape_cast %47 : vector<8x8x256xf32> to vector<1x8x8x256xf32>
    tpu.vector_store %arg5[%c0_35, %c0_36, %c0_37, %c0_38], %50 {strides = array<i32>} : memref<1x8x8x256xf32, #tpu.memory_space<vmem>>, vector<1x8x8x256xf32>,
    return
  }
  func.func @transform_0(%arg0: i32, %arg1: i32) -> (i32, i32, i32, i32) {
    %c0_i32 = arith.constant 0 : i32
    %c0_i32_0 = arith.constant 0 : i32
    %c0_i32_1 = arith.constant 0 : i32
    %c0_i32_2 = arith.constant 0 : i32
    return %arg0, %c0_i32, %c0_i32_0, %c0_i32_1 : i32, i32, i32, i32
  }
  func.func @transform_1(%arg0: i32, %arg1: i32) -> (i32, i32) {
    %c0_i32 = arith.constant 0 : i32
    %c0_i32_0 = arith.constant 0 : i32
    %c0_i32_1 = arith.constant 0 : i32
    return %c0_i32, %c0_i32_0 : i32, i32
  }
  func.func @transform_2(%arg0: i32, %arg1: i32) -> (i32, i32) {
    %c0_i32 = arith.constant 0 : i32
    %c0_i32_0 = arith.constant 0 : i32
    %c0_i32_1 = arith.constant 0 : i32
    return %c0_i32, %c0_i32_0 : i32, i32
  }
  func.func @transform_3(%arg0: i32, %arg1: i32) -> (i32, i32, i32, i32) {
    %c0_i32 = arith.constant 0 : i32
    %c0_i32_0 = arith.constant 0 : i32
    %c0_i32_1 = arith.constant 0 : i32
    return %arg0, %arg1, %c0_i32, %c0_i32_0 : i32, i32, i32, i32
  }
}

</mosaic_0001>

<bundles_post_ra>
// kernel: upsampling_forward.1
= control target key start
LH: loop header
LB: loop body
LE: loop exit
PB: predicated region body
PF: predicated region fallthrough
CT: control target
= control target key end

     0   :  { %8 = vsyncpa [#allocation3], 0  ;;  %s2962_s12 = smov 0   ;;  %s2964_s13 = smov 0   ;;  %s3330_s0 = inlined_call_operand.vmem [shape: bf16[2,10,10,128], index: 0, kind: input, shape index: {}]   ;;  %s3331_s1 = inlined_call_operand.hbm [shape: bf16[1152,256], index: 1, kind: input, shape index: {}]   ;;  %s3332_s2 = inlined_call_operand.vmem [shape: f32[1,256], index: 2, kind: input, shape index: {}]   ;;  %s3333_s3 = inlined_call_operand.vmem [shape: f32[2,8,8,256], index: 3, kind: output, shape index: {}]  }
   0x1   :  { %s2966_s14 = smov 0  }
   0x2 LB: > { %s2182_s15 = sadd.s32 4294967295, %s2936_s14   ;;  %s26_s16 = sadd.s32 1, %s2932_s13  ;;  %s2936_s14 = sphi %s2966_s14, %s14_s14   ;;  %s2932_s13 = sphi %s2964_s13, %s3343_s13   ;;  %s2928_s12 = sphi %s2962_s12, %s3342_s12  }
   0x3   : > { %p28_p0 = scmp.ge.s32.totalorder %s26_s16, 2  ;;  %p2184_p1 = scmp.ge.s32.totalorder %s2936_s14, 1 }
   0x4   : > { %p127_p2 = scmp.lt.s32.totalorder %s2936_s14, 3  ;;  %p2987_p4 = scmp.eq.s32.totalorder %s2182_s15, 0 }
   0x5   : > { %s3345_s16 = smov (%p28_p0, %s26_s16), 0  ;;  %s2938_s19 = smov [#allocation2]  }
   0x6   : > { %p2983_p3 = pnand %p2184_p1, %p127_p2  ;;  %s139_s20 = sshll.u32 %s2938_s19, 4  ;;  %s140_s20 = int_to_ptr.vmem [resolvable:$true] %s139_s20 }
   0x7   : > { %s3338_s18 = scalar_select %p2987_p4, 1, 0 }
   0x8   : > { %s3337_s17 = scalar_select %p2983_p3, 1, 0 }
   0x9   : > { %p2572_p5 = pneg %p2983_p3  ;;  %s2882_s24 = scalar_lea.hbm %s3331_s1, 18432 }
   0xa   : > { %p2883_p7 = scmp.ne.s32.totalorder %s3331_s1, %s2882_s24  ;;  %p2889_p11 = scmp.lt.u32.totalorder %s2882_s24, %s3331_s1 }
   0xb   : > { %p2995_p6 = pnand %p2987_p4, %p2572_p5 }
   0xd   : > { %p2884_p8 = pneg %p2995_p6 }
   0xf   : > { %p2885_p9 = pnand %p2884_p8, %p2883_p7 }
  0x11   : > { %p2886_p10 = pneg %p2885_p9 }
  0x13   : > { %p2891_p12 = pnand %p2889_p11, %p2886_p10 }
  0x15   : > { %2894 = shalt.err (!%p2891_p12)
}
  0x16   : > { %s2895_s29 = scalar_lea.vmem %s140_s20, 18432  ;;  %p2903_p2 = scmp.lt.s32.totalorder %s140_s20, %s140_s20 }
  0x17   : > { %p2896_p13 = scmp.ne.s32.totalorder %s140_s20, %s2895_s29  ;;  %p2904_p5 = scmp.lt.s32.totalorder %s2895_s29, %s2895_s29 }
  0x19   : > { %p2898_p0 = pnand %p2896_p13, %p2884_p8  ;;  %p2905_p4 = por %p2904_p5, %p2903_p2 }
  0x1b   : > { %p2899_p1 = pneg %p2898_p0 }
  0x1d   : > { %p2906_p3 = pnand %p2905_p4, %p2899_p1 }
  0x1f   : > { %2909 = shalt.err (!%p2906_p3)
}
  0x20   : > { %s2939_s30 = smov 128   ;;  %s2940_s4 = smov 8  }
  0x21   : > { %2575 = dma.hbm_to_vmem [thread:$0]  (!%p2995_p6), %s3331_s1, 18432, %s140_s20, [#allocation3], %s2939_s30, %s2939_s30, %s2940_s4  }
  0x22   : > { %p3340_p7 = scmp.ne.s32.totalorder %s3337_s17, 0 }
  0x23   : > { %p3341_p9 = scmp.ne.s32.totalorder (!%p3340_p7), %s3338_s18, 0 }
  0x24   : > { %166 = sbr.rel (%p3340_p7) target bundleno = 434 (0x1b2), region = 32 }
  0x2b   : > { %2923 = dma.done.wait (%p3341_p9), [#allocation3], 18432  }
  0x2c   : > { %2925 = vsyncadd (%p3341_p9), [#allocation3], 4294948864  ;;  %v2606_v0 = vld [vmem:[#allocation2 + $0x4] ss:$8 sps:$4 sm:$0xff]   ;;  %v2610_v2 = vld [vmem:[#allocation2] ss:$8 sps:$4 sm:$0xff]  }
  0x2d   : > { %v2608_v1 = vld [vmem:[#allocation2 + $0x204] ss:$8 sps:$4 sm:$0xff]   ;;  %1676 = vmatprep.subr.bf16.mxu1 %v2606_v0  ;;  %v2611_v3 = vld [vmem:[#allocation2 + $0x200] ss:$8 sps:$4 sm:$0xff]   ;;  %v2612_v4 = vld [vmem:[#allocation2 + $0x14] ss:$8 sps:$4 sm:$0xff]  }
  0x2e   : > { %1822 = vmatprep.subr.bf16.mxu0 %v2608_v1  ;;  %1677 = vmatpush1.bf16.msra.mxu1 %v2610_v2  ;;  %v2614_v5 = vld [vmem:[#allocation2 + $0x214] ss:$8 sps:$4 sm:$0xff]   ;;  %v2616_v6 = vld [vmem:[#allocation2 + $0x10] ss:$8 sps:$4 sm:$0xff]   ;;  %v2618_v8 = vld [vmem:[#allocation2 + $0x24] ss:$8 sps:$4 sm:$0xff]  }
  0x2f   : > { %1823 = vmatpush1.bf16.msra.mxu0 %v2611_v3  ;;  %1678 = vmatprep.subr.bf16.mxu1 %v2612_v4  ;;  %v2617_v7 = vld [vmem:[#allocation2 + $0x210] ss:$8 sps:$4 sm:$0xff]   ;;  %v2620_v9 = vld [vmem:[#allocation2 + $0x224] ss:$8 sps:$4 sm:$0xff]   ;;  %v2622_v10 = vld [vmem:[#allocation2 + $0x20] ss:$8 sps:$4 sm:$0xff]  }
  0x30   : > { %1824 = vmatprep.subr.bf16.mxu0 %v2614_v5  ;;  %v2623_v11 = vld [vmem:[#allocation2 + $0x220] ss:$8 sps:$4 sm:$0xff]   ;;  %v2624_v12 = vld [vmem:[#allocation2 + $0x34] ss:$8 sps:$4 sm:$0xff]   ;;  %v2628_v14 = vld [vmem:[#allocation2 + $0x30] ss:$8 sps:$4 sm:$0xff]  }
  0x31   : > { %v2626_v13 = vld [vmem:[#allocation2 + $0x234] ss:$8 sps:$4 sm:$0xff]   ;;  %v2629_v15 = vld [vmem:[#allocation2 + $0x230] ss:$8 sps:$4 sm:$0xff]   ;;  %v2630_v16 = vld [vmem:[#allocation2 + $0x44] ss:$8 sps:$4 sm:$0xff]  }
  0x32   : > { %1679 = vmatpush1.bf16.msra.mxu1 %v2616_v6  ;;  %v2632_v17 = vld [vmem:[#allocation2 + $0x244] ss:$8 sps:$4 sm:$0xff]   ;;  %v2634_v18 = vld [vmem:[#allocation2 + $0x40] ss:$8 sps:$4 sm:$0xff]   ;;  %v2636_v20 = vld [vmem:[#allocation2 + $0x54] ss:$8 sps:$4 sm:$0xff]  }
  0x33   : > { %1825 = vmatpush1.bf16.msra.mxu0 %v2617_v7  ;;  %1680 = vmatprep.subr.bf16.mxu1 %v2618_v8  ;;  %v2635_v19 = vld [vmem:[#allocation2 + $0x240] ss:$8 sps:$4 sm:$0xff]   ;;  %v2638_v21 = vld [vmem:[#allocation2 + $0x254] ss:$8 sps:$4 sm:$0xff]   ;;  %v2640_v22 = vld [vmem:[#allocation2 + $0x50] ss:$8 sps:$4 sm:$0xff]  }
  0x34   : > { %1826 = vmatprep.subr.bf16.mxu0 %v2620_v9  ;;  %v2641_v23 = vld [vmem:[#allocation2 + $0x250] ss:$8 sps:$4 sm:$0xff]   ;;  %v2642_v24 = vld [vmem:[#allocation2 + $0x64] ss:$8 sps:$4 sm:$0xff]   ;;  %v2646_v26 = vld [vmem:[#allocation2 + $0x60] ss:$8 sps:$4 sm:$0xff]  }
  0x35   : > { %v2644_v25 = vld [vmem:[#allocation2 + $0x264] ss:$8 sps:$4 sm:$0xff]   ;;  %v2647_v27 = vld [vmem:[#allocation2 + $0x260] ss:$8 sps:$4 sm:$0xff]   ;;  %v2648_v28 = vld [vmem:[#allocation2 + $0x74] ss:$8 sps:$4 sm:$0xff]  }
  0x36   : > { %1681 = vmatpush1.bf16.msra.mxu1 %v2622_v10  ;;  %v2650_v29 = vld [vmem:[#allocation2 + $0x274] ss:$8 sps:$4 sm:$0xff]   ;;  %v2652_v30 = vld [vmem:[#allocation2 + $0x70] ss:$8 sps:$4 sm:$0xff]   ;;  %p195_p3 = scmp.lt.s32.totalorder %s2928_s12, 1 }
  0x37   : > { %1827 = vmatpush1.bf16.msra.mxu0 %v2623_v11  ;;  %1682 = vmatprep.subr.bf16.mxu1 %v2624_v12  ;;  %v2653_v31 = vld [vmem:[#allocation2 + $0x270] ss:$8 sps:$4 sm:$0xff]   ;;  %v2654_v32 = vld [vmem:[#allocation2 + $0x84] ss:$8 sps:$4 sm:$0xff]   ;;  %v2658_v34 = vld [vmem:[#allocation2 + $0x80] ss:$8 sps:$4 sm:$0xff]  }
  0x38   : > { %1828 = vmatprep.subr.bf16.mxu0 %v2626_v13  ;;  %v2656_v33 = vld [vmem:[#allocation2 + $0x284] ss:$8 sps:$4 sm:$0xff]   ;;  %v2659_v35 = vld [vmem:[#allocation2 + $0x280] ss:$8 sps:$4 sm:$0xff]   ;;  %s3347_s12 = smov (!%p195_p3, %s2928_s12), 1 }
  0x39   : > { %v2660_v36 = vld [vmem:[#allocation2 + $0x94] ss:$8 sps:$4 sm:$0xff]   ;;  %v2664_v38 = vld [vmem:[#allocation2 + $0x90] ss:$8 sps:$4 sm:$0xff]   ;;  %s2567_s7 = smul.u32 80, %s3347_s12  ;;  %s2470_s17 = sshll.u32 %s3347_s12, 7 }
  0x3a   : > { %1683 = vmatpush1.bf16.msra.mxu1 %v2628_v14  ;;  %v2662_v37 = vld [vmem:[#allocation2 + $0x294] ss:$8 sps:$4 sm:$0xff]   ;;  %v2665_v39 = vld [vmem:[#allocation2 + $0x290] ss:$8 sps:$4 sm:$0xff]   ;;  %v2666_v40 = vld [vmem:[#allocation2 + $0xa4] ss:$8 sps:$4 sm:$0xff]   ;;  %s3295_s20 = scalar_lea.vmem %s3333_s3, %s2470_s17 }
  0x3b   : > { %1829 = vmatpush1.bf16.msra.mxu0 %v2629_v15  ;;  %1684 = vmatprep.subr.bf16.mxu1 %v2630_v16  ;;  %v2668_v41 = vld [vmem:[#allocation2 + $0x2a4] ss:$8 sps:$4 sm:$0xff]   ;;  %v2670_v42 = vld [vmem:[#allocation2 + $0xa0] ss:$8 sps:$4 sm:$0xff]   ;;  %s3029_s10 = scalar_lea.vmem %s3330_s0, %s2567_s7  ;;  %v2672_v44 = vld [vmem:[#allocation2 + $0xb4] ss:$8 sps:$4 sm:$0xff]  }
  0x3c   : > { %1830 = vmatprep.subr.bf16.mxu0 %v2632_v17  ;;  %v2671_v43 = vld [vmem:[#allocation2 + $0x2a0] ss:$8 sps:$4 sm:$0xff]   ;;  %v2674_v45 = vld [vmem:[#allocation2 + $0x2b4] ss:$8 sps:$4 sm:$0xff]   ;;  %v2676_v46 = vld [vmem:[#allocation2 + $0xb0] ss:$8 sps:$4 sm:$0xff]  }
  0x3d   : > { %v2677_v47 = vld [vmem:[#allocation2 + $0x2b0] ss:$8 sps:$4 sm:$0xff]   ;;  %v3032_v48 = vld [vmem:[%s3029_s10] sm:$0xf]  ;;  %v3035_v49 = vld [vmem:[%s3029_s10 + $0x8] sm:$0xf] }
  0x3e   : > { %1685 = vmatpush1.bf16.msra.mxu1 %v2634_v18  ;;  %v224_v50 = vld [vmem:[%s3029_s10 + $0x4] sm:$0x1]  ;;  %v225_v51 = vld [vmem:[%s3029_s10 + $0xc] sm:$0x1]  ;;  %v232_v52 = vld [vmem:[%s3029_s10] sm:$0xe] }
  0x3f   : > { %1831 = vmatpush1.bf16.msra.mxu0 %v2635_v19  ;;  %1686 = vmatprep.subr.bf16.mxu1 %v2636_v20  ;;  %v233_v53 = vld [vmem:[%s3029_s10 + $0x8] sm:$0xe]  ;;  %v2240_v54 = vcombine.low %v3032_v48, %v224_v50  ;;  %v2241_v55 = vcombine.low %v3035_v49, %v225_v51  ;;  %v2678_v56 = vld [vmem:[#allocation2 + $0xc4] ss:$8 sps:$4 sm:$0xff]   ;;  %v2248_v58 = vcombine.low %v232_v52, %v224_v50  ;;  %v2684_v3 = vld [vmem:[#allocation2 + $0xd4] ss:$8 sps:$4 sm:$0xff]  }
  0x40   : > { %1832 = vmatprep.subr.bf16.mxu0 %v2638_v21  ;;  %v2680_v57 = vld [vmem:[#allocation2 + $0x2c4] ss:$8 sps:$4 sm:$0xff]   ;;  %v2249_v59 = vcombine.low %v233_v53, %v225_v51  ;;  %v2682_v60 = vld [vmem:[#allocation2 + $0xc0] ss:$8 sps:$4 sm:$0xff]   ;;  %v2686_v4 = vld [vmem:[#allocation2 + $0x2d4] ss:$8 sps:$4 sm:$0xff]  }
  0x41   : > { %v2683_v61 = vld [vmem:[#allocation2 + $0x2c0] ss:$8 sps:$4 sm:$0xff]   ;;  %v337_v62 = vshrl.u32 %v2240_v54, 16  ;;  %v339_v63 = vshll.u32 %v2240_v54, 16  ;;  %v344_v0 = vshrl.u32 %v2241_v55, 16  ;;  %v346_v1 = vshll.u32 %v2241_v55, 16 }
  0x42   : > { %1687 = vmatpush1.bf16.msra.mxu1 %v2640_v22  ;;  %v3044_v2 = vld [vmem:[%s3029_s10 + $0x8] sm:$0xf]  ;;  %v3046_v5 = vrot.slane %v2248_v58, 1  ;;  %v3048_v6 = vrot.slane %v2249_v59, 1  ;;  %v3051_v7 = vld [vmem:[%s3029_s10 + $0x10] sm:$0xf] }
  0x43   : > { %1833 = vmatpush1.bf16.msra.mxu0 %v2641_v23  ;;  %1688 = vmatprep.subr.bf16.mxu1 %v2642_v24  ;;  %v2200_v8 = vld [vmem:[%s3029_s10 + $0xc] sm:$0x1]  ;;  %v341_v9 = vrot.slane %v339_v63, 1  ;;  %v348_v10 = vrot.slane %v346_v1, 1  ;;  %v2201_v11 = vld [vmem:[%s3029_s10 + $0x14] sm:$0x1] }
  0x44   : > { %1834 = vmatprep.subr.bf16.mxu0 %v2644_v25  ;;  %v2208_v12 = vld [vmem:[%s3029_s10 + $0x8] sm:$0xe]  ;;  %v2256_v13 = vcombine.low %v3044_v2, %v2200_v8  ;;  %v2290_v14 = vcombine.low %v3046_v5, %v3048_v6  ;;  %v2209_v15 = vld [vmem:[%s3029_s10 + $0x10] sm:$0xe]  ;;  %v2257_v16 = vcombine.low %v3051_v7, %v2201_v11  ;;  %v2719_v51 = vld [vmem:[#allocation2 + $0x114] ss:$8 sps:$4 sm:$0xff]  }
  0x45   : > { %v2264_v17 = vcombine.low %v2208_v12, %v2200_v8  ;;  %v342_v18 = vor.u32 %v341_v9, %v337_v62  ;;  %v349_v19 = vor.u32 %v348_v10, %v344_v0  ;;  %v2265_v22 = vcombine.low %v2209_v15, %v2201_v11  ;;  %v2688_v24 = vld [vmem:[#allocation2 + $0xd0] ss:$8 sps:$4 sm:$0xff]   ;;  %v2713_v50 = vld [vmem:[#allocation2 + $0x300] ss:$8 sps:$4 sm:$0xff]   ;;  %v2722_v52 = vld [vmem:[#allocation2 + $0x314] ss:$8 sps:$4 sm:$0xff]  }
  0x46   : > { %1689 = vmatpush1.bf16.msra.mxu1 %v2646_v26  ;;  %v467_v20 = vshll.u32 %v2256_v13, 16  ;;  %v474_v21 = vshll.u32 %v2257_v16, 16  ;;  %v2689_v25 = vld [vmem:[#allocation2 + $0x2d0] ss:$8 sps:$4 sm:$0xff]   ;;  %v2723_v55 = vld [vmem:[#allocation2 + $0x120] ss:$8 sps:$4 sm:$0xff]  }
  0x47   : > { %1835 = vmatpush1.bf16.msra.mxu0 %v2647_v27  ;;  %1690 = vmatprep.subr.bf16.mxu1 %v2648_v28  ;;  %v544_v23 = vrot.slane %v2264_v17, 1  ;;  %v2289_v26 = vcombine.low %v342_v18, %v349_v19  ;;  %v2690_v27 = vld [vmem:[#allocation2 + $0xe4] ss:$8 sps:$4 sm:$0xff]   ;;  %v2717_v53 = vld [vmem:[#allocation2 + $0x110] ss:$8 sps:$4 sm:$0xff]  }
  0x48   : > { %1836 = vmatprep.subr.bf16.mxu0 %v2650_v29  ;;  %v2692_v28 = vld [vmem:[#allocation2 + $0x2e4] ss:$8 sps:$4 sm:$0xff]   ;;  %v545_v29 = vrot.slane %v2265_v22, 1  ;;  %v2720_v54 = vld [vmem:[#allocation2 + $0x310] ss:$8 sps:$4 sm:$0xff]  }
  0x49   : > { %1708 = vmatprep.mubr.bf16.mxu1 %v2289_v26  ;;  %v2734_v58 = vld [vmem:[#allocation2 + $0x334] ss:$8 sps:$4 sm:$0xff]   ;;  %v2729_v59 = vld [vmem:[#allocation2 + $0x130] ss:$8 sps:$4 sm:$0xff]   ;;  %v2740_v62 = vld [vmem:[#allocation2 + $0x344] ss:$8 sps:$4 sm:$0xff]  }
  0x4a   : > { %1691 = vmatpush1.bf16.msra.mxu1 %v2652_v30  ;;  %v465_v30 = vshrl.u32 %v2256_v13, 16  ;;  %v3064_v63 = vld [vmem:[%s3029_s10 + $0x10] sm:$0xf]  ;;  %v3067_v0 = vld [vmem:[%s3029_s10 + $0x18] sm:$0xf] }
  0x4b   : > { %1837 = vmatpush1.bf16.msra.mxu0 %v2653_v31  ;;  %1692 = vmatprep.subr.bf16.mxu1 %v2654_v32  ;;  %v469_v31 = vrot.slane %v467_v20, 1  ;;  %v472_v32 = vshrl.u32 %v2257_v16, 16  ;;  %v3070_v1 = vld [vmem:[%s3029_s10 + $0x14] sm:$0x1]  ;;  %v3083_v10 = vld [vmem:[%s3029_s10 + $0x20] sm:$0xf] }
  0x4c   : > { %1838 = vmatprep.subr.bf16.mxu0 %v2656_v33  ;;  %v476_v33 = vrot.slane %v474_v21, 1  ;;  %v2242_v8 = vcombine.low %v3064_v63, %v3070_v1  ;;  %v2202_v11 = vld [vmem:[%s3029_s10 + $0x1c] sm:$0x1]  ;;  %v2203_v12 = vld [vmem:[%s3029_s10 + $0x24] sm:$0x1] }
  0x4d   : > { %v2735_v13 = vld [vmem:[#allocation2 + $0x140] ss:$8 sps:$4 sm:$0xff]   ;;  %v2210_v16 = vld [vmem:[%s3029_s10 + $0x18] sm:$0xe]  ;;  %v2259_v19 = vcombine.low %v3083_v10, %v2203_v12 }
  0x4e   : > { %1693 = vmatpush1.bf16.msra.mxu1 %v2658_v34  ;;  %v2293_v34 = vcombine.low %v544_v23, %v545_v29  ;;  %v2738_v15 = vld [vmem:[#allocation2 + $0x340] ss:$8 sps:$4 sm:$0xff]   ;;  %v351_v20 = vshrl.u32 %v2242_v8, 16  ;;  %v353_v21 = vshll.u32 %v2242_v8, 16  ;;  %v2266_v26 = vcombine.low %v2210_v16, %v2202_v11  ;;  %v2213_v8 = vld [vmem:[%s3029_s10 + $0x30] sm:$0xe] }
  0x4f   : > { %1839 = vmatpush1.bf16.msra.mxu0 %v2659_v35  ;;  %1694 = vmatprep.subr.bf16.mxu1 %v2660_v36  ;;  %v2694_v35 = vld [vmem:[#allocation2 + $0xe0] ss:$8 sps:$4 sm:$0xff]  }
  0x50   : > { %1840 = vmatprep.subr.bf16.mxu0 %v2662_v37  ;;  %v2695_v36 = vld [vmem:[#allocation2 + $0x2e0] ss:$8 sps:$4 sm:$0xff]   ;;  %v2696_v37 = vld [vmem:[#allocation2 + $0xf4] ss:$8 sps:$4 sm:$0xff]   ;;  %1854 = vmatprep.mubr.bf16.mxu0 %v2293_v34  ;;  %v546_v34 = vrot.slane %v2266_v26, 1 }
  0x51   : > { %v2211_v17 = vld [vmem:[%s3029_s10 + $0x20] sm:$0xe]  ;;  %v2756_v26 = vld [vmem:[#allocation2 + $0x370] ss:$8 sps:$4 sm:$0xff]  }
  0x52   : > { %1695 = vmatpush1.bf16.msra.mxu1 %v2664_v38  ;;  %v2698_v38 = vld [vmem:[#allocation2 + $0x2f4] ss:$8 sps:$4 sm:$0xff]  }
  0x53   : > { %1841 = vmatpush1.bf16.msra.mxu0 %v2665_v39  ;;  %1696 = vmatprep.subr.bf16.mxu1 %v2666_v40  ;;  %v470_v39 = vor.u32 %v469_v31, %v465_v30  ;;  %v477_v40 = vor.u32 %v476_v33, %v472_v32  ;;  %v355_v30 = vrot.slane %v353_v21, 1  ;;  %v486_v32 = vshrl.u32 %v2259_v19, 16 }
  0x54   : > { %1842 = vmatprep.subr.bf16.mxu0 %v2668_v41  ;;  %v2700_v41 = vld [vmem:[#allocation2 + $0xf0] ss:$8 sps:$4 sm:$0xff]   ;;  %v488_v33 = vshll.u32 %v2259_v19, 16 }
  0x56   : > { %1697 = vmatpush1.bf16.msra.mxu1 %v2670_v42  ;;  %v2701_v42 = vld [vmem:[#allocation2 + $0x2f0] ss:$8 sps:$4 sm:$0xff]  }
  0x57   : > { %1843 = vmatpush1.bf16.msra.mxu0 %v2671_v43  ;;  %1698 = vmatprep.subr.bf16.mxu1 %v2672_v44  ;;  %v2708_v43 = vld [vmem:[#allocation2 + $0x104] ss:$8 sps:$4 sm:$0xff]  }
  0x58   : > { %1844 = vmatprep.subr.bf16.mxu0 %v2674_v45  ;;  %v2715_v44 = vld [vmem:[#allocation2 + $0x304] ss:$8 sps:$4 sm:$0xff]   ;;  %v2288_v45 = vcombine.low %v3032_v48, %v3035_v49 }
  0x59   : > { %v2725_v48 = vld [vmem:[#allocation2 + $0x124] ss:$8 sps:$4 sm:$0xff]  }
  0x5a   : > { %1699 = vmatpush1.bf16.msra.mxu1 %v2676_v46  ;;  %v2292_v46 = vcombine.low %v470_v39, %v477_v40  ;;  %v2728_v49 = vld [vmem:[#allocation2 + $0x324] ss:$8 sps:$4 sm:$0xff]   ;;  %v490_v40 = vrot.slane %v488_v33, 1 }
  0x5b   : > { %1845 = vmatpush1.bf16.msra.mxu0 %v2677_v47  ;;  %1700 = vmatprep.subr.bf16.mxu1 %v2678_v56  ;;  %v2706_v47 = vld [vmem:[#allocation2 + $0x100] ss:$8 sps:$4 sm:$0xff]  }
  0x5c   : > { %1846 = vmatprep.subr.bf16.mxu0 %v2680_v57  ;;  %v2726_v56 = vld [vmem:[#allocation2 + $0x320] ss:$8 sps:$4 sm:$0xff]   ;;  %v2731_v57 = vld [vmem:[#allocation2 + $0x134] ss:$8 sps:$4 sm:$0xff]  }
  0x5e   : > { %1701 = vmatpush1.bf16.msra.mxu1 %v2682_v60  ;;  %v2732_v60 = vld [vmem:[#allocation2 + $0x330] ss:$8 sps:$4 sm:$0xff]  }
  0x5f   : > { %1847 = vmatpush1.bf16.msra.mxu0 %v2683_v61  ;;  %1702 = vmatprep.subr.bf16.mxu1 %v2684_v3  ;;  %v2737_v61 = vld [vmem:[#allocation2 + $0x144] ss:$8 sps:$4 sm:$0xff]   ;;  %v3073_v3 = vld [vmem:[%s3029_s10 + $0x1c] sm:$0x1] }
  0x60   : > { %1848 = vmatprep.subr.bf16.mxu0 %v2686_v4  ;;  %v3076_v4 = vld [vmem:[%s3029_s10 + $0x18] sm:$0xf]  ;;  %v2243_v9 = vcombine.low %v3067_v0, %v3073_v3 }
  0x61   : > { %v2258_v18 = vcombine.low %v3076_v4, %v2202_v11 }
  0x62   : > { %1703 = vmatpush1.bf16.msra.mxu1 %v2688_v24  ;;  %v358_v22 = vshrl.u32 %v2243_v9, 16  ;;  %v360_v23 = vshll.u32 %v2243_v9, 16  ;;  %v2743_v24 = vld [vmem:[#allocation2 + $0x154] ss:$8 sps:$4 sm:$0xff]  }
  0x63   : > { %1849 = vmatpush1.bf16.msra.mxu0 %v2689_v25  ;;  %1704 = vmatprep.subr.bf16.mxu1 %v2690_v27  ;;  %v2746_v25 = vld [vmem:[#allocation2 + $0x354] ss:$8 sps:$4 sm:$0xff]   ;;  %v2267_v27 = vcombine.low %v2211_v17, %v2203_v12  ;;  %v481_v29 = vshll.u32 %v2258_v18, 16  ;;  %v2753_v17 = vld [vmem:[#allocation2 + $0x170] ss:$8 sps:$4 sm:$0xff]  }
  0x64   : > { %1850 = vmatprep.subr.bf16.mxu0 %v2692_v28  ;;  %v479_v28 = vshrl.u32 %v2258_v18, 16  ;;  %v362_v31 = vrot.slane %v360_v23, 1 }
  0x66   : > { %1705 = vmatpush1.bf16.msra.mxu1 %v2694_v35  ;;  %v547_v35 = vrot.slane %v2267_v27, 1  ;;  %v363_v39 = vor.u32 %v362_v31, %v358_v22  ;;  %v2764_v31 = vld [vmem:[#allocation2 + $0x384] ss:$8 sps:$4 sm:$0xff]  }
  0x67   : > { %1851 = vmatpush1.bf16.msra.mxu0 %v2695_v36  ;;  %1706 = vmatprep.subr.bf16.mxu1 %v2696_v37  ;;  %v483_v36 = vrot.slane %v481_v29, 1  ;;  %v2741_v37 = vld [vmem:[#allocation2 + $0x150] ss:$8 sps:$4 sm:$0xff]  }
  0x68   : > { %1852 = vmatprep.subr.bf16.mxu0 %v2698_v38  ;;  %v356_v38 = vor.u32 %v355_v30, %v351_v20  ;;  %v2761_v30 = vld [vmem:[#allocation2 + $0x184] ss:$8 sps:$4 sm:$0xff]  }
  0x6a   : > { %1707 = vmatpush1.bf16.msra.mxu1 %v2700_v41  ;;  %v2744_v41 = vld [vmem:[#allocation2 + $0x350] ss:$8 sps:$4 sm:$0xff]  }
  0x6b   : > { %1853 = vmatpush1.bf16.msra.mxu0 %v2701_v42  ;;  %1749 = vmatprep.subr.bf16.mxu1 %v2708_v43  ;;  %v2749_v42 = vld [vmem:[#allocation2 + $0x164] ss:$8 sps:$4 sm:$0xff]   ;;  %v2302_v43 = vcombine.low %v546_v34, %v547_v35  ;;  %v2759_v35 = vld [vmem:[#allocation2 + $0x180] ss:$8 sps:$4 sm:$0xff]  }
  0x6c   : > { %1895 = vmatprep.subr.bf16.mxu0 %v2715_v44  ;;  %v484_v44 = vor.u32 %v483_v36, %v479_v28  ;;  %v2762_v36 = vld [vmem:[#allocation2 + $0x380] ss:$8 sps:$4 sm:$0xff]  }
  0x6d   : > { %1709 = vmatmul.mubr.bf16.vlgmr.msra.gmra.mrb[0].mxu1 %v2288_v45  ;;  %v2752_v45 = vld [vmem:[#allocation2 + $0x364] ss:$8 sps:$4 sm:$0xff]  }
  0x6e   : > { %1855 = vmatmul.mubr.bf16.vlgmr.msra.gmra.mrb[0].mxu0 %v2292_v46  ;;  %1750 = vmatpush1.bf16.msra.mxu1 %v2706_v47  ;;  %v2298_v46 = vcombine.low %v356_v38, %v363_v39  ;;  %v491_v47 = vor.u32 %v490_v40, %v486_v32  ;;  %v2767_v39 = vld [vmem:[#allocation2 + $0x194] ss:$8 sps:$4 sm:$0xff]  }
  0x6f   : > { %1896 = vmatpush1.bf16.msra.mxu0 %v2713_v50  ;;  %1751 = vmatprep.subr.bf16.mxu1 %v2719_v51  ;;  %v3092_v50 = vld [vmem:[%s3029_s10 + $0x20] sm:$0xf]  ;;  %v3095_v51 = vld [vmem:[%s3029_s10 + $0x28] sm:$0xf]  ;;  %v2770_v40 = vld [vmem:[#allocation2 + $0x394] ss:$8 sps:$4 sm:$0xff]  }
  0x70   : > { %1897 = vmatprep.subr.bf16.mxu0 %v2722_v52  ;;  %v2747_v52 = vld [vmem:[#allocation2 + $0x160] ss:$8 sps:$4 sm:$0xff]   ;;  %1864 = vmatprep.mubr.bf16.mxu0 %v2302_v43 }
  0x71   : > { %1718 = vmatprep.mubr.bf16.mxu1 %v2298_v46  ;;  %v3130_v46 = vld [vmem:[%s3029_s10 + $0x34] sm:$0x1] }
  0x72   : > { %1752 = vmatpush1.bf16.msra.mxu1 %v2717_v53  ;;  %v2750_v53 = vld [vmem:[#allocation2 + $0x360] ss:$8 sps:$4 sm:$0xff]  }
  0x73   : > { %1898 = vmatpush1.bf16.msra.mxu0 %v2720_v54  ;;  %1753 = vmatprep.subr.bf16.mxu1 %v2725_v48  ;;  %v2297_v54 = vcombine.low %v3064_v63, %v3067_v0  ;;  %v3100_v48 = vld [vmem:[%s3029_s10 + $0x24] sm:$0x1]  ;;  %v2205_v63 = vld [vmem:[%s3029_s10 + $0x34] sm:$0x1]  ;;  %v2212_v0 = vld [vmem:[%s3029_s10 + $0x28] sm:$0xe] }
  0x74   : > { %1899 = vmatprep.subr.bf16.mxu0 %v2728_v49  ;;  %v3103_v49 = vld [vmem:[%s3029_s10 + $0x2c] sm:$0x1]  ;;  %v2269_v19 = vcombine.low %v2213_v8, %v2205_v63 }
  0x75   : > { %1719 = vmatmul.mubr.bf16.gmra.mrb[4].mxu1 %v2297_v54  ;;  %v3143_v54 = vld [vmem:[%s3029_s10 + $0x40] sm:$0xf] }
  0x76   : > { %1754 = vmatpush1.bf16.msra.mxu1 %v2723_v55  ;;  %v3106_v55 = vld [vmem:[%s3029_s10 + $0x28] sm:$0xf]  ;;  %v549_v28 = vrot.slane %v2269_v19, 1 }
  0x77   : > { %1900 = vmatpush1.bf16.msra.mxu0 %v2726_v56  ;;  %1755 = vmatprep.subr.bf16.mxu1 %v2731_v57  ;;  %v2755_v56 = vld [vmem:[#allocation2 + $0x174] ss:$8 sps:$4 sm:$0xff]  }
  0x78   : > { %1901 = vmatprep.subr.bf16.mxu0 %v2734_v58  ;;  %v2758_v57 = vld [vmem:[#allocation2 + $0x374] ss:$8 sps:$4 sm:$0xff]   ;;  %v2301_v58 = vcombine.low %v484_v44, %v491_v47  ;;  %v3124_v44 = vld [vmem:[%s3029_s10 + $0x30] sm:$0xf] }
  0x79   : > { %v3133_v47 = vld [vmem:[%s3029_s10 + $0x3c] sm:$0x1] }
  0x7a   : > { %1756 = vmatpush1.bf16.msra.mxu1 %v2729_v59  ;;  %v2244_v59 = vcombine.low %v3092_v50, %v3100_v48  ;;  %1865 = vmatmul.mubr.bf16.gmra.mrb[4].mxu0 %v2301_v58  ;;  %v2765_v58 = vld [vmem:[#allocation2 + $0x190] ss:$8 sps:$4 sm:$0xff]  }
  0x7b   : > { %1902 = vmatpush1.bf16.msra.mxu0 %v2732_v60  ;;  %1757 = vmatprep.subr.bf16.mxu1 %v2737_v61  ;;  %v2245_v60 = vcombine.low %v3095_v51, %v3103_v49  ;;  %v3113_v61 = vld [vmem:[%s3029_s10 + $0x30] sm:$0xf] }
  0x7c   : > { %1903 = vmatprep.subr.bf16.mxu0 %v2740_v62  ;;  %v2204_v62 = vld [vmem:[%s3029_s10 + $0x2c] sm:$0x1]  ;;  %v2261_v11 = vcombine.low %v3113_v61, %v2205_v63  ;;  %v365_v12 = vshrl.u32 %v2244_v59, 16 }
  0x7d   : > { %v2260_v9 = vcombine.low %v3106_v55, %v2204_v62  ;;  %v374_v16 = vshll.u32 %v2245_v60, 16  ;;  %v2268_v18 = vcombine.low %v2212_v0, %v2204_v62  ;;  %v2215_v62 = vld [vmem:[%s3029_s10 + $0x40] sm:$0xe] }
  0x7e   : > { %1758 = vmatpush1.bf16.msra.mxu1 %v2735_v13  ;;  %v367_v13 = vshll.u32 %v2244_v59, 16  ;;  %v2768_v59 = vld [vmem:[#allocation2 + $0x390] ss:$8 sps:$4 sm:$0xff]  }
  0x7f   : > { %1904 = vmatpush1.bf16.msra.mxu0 %v2738_v15  ;;  %1759 = vmatprep.subr.bf16.mxu1 %v2743_v24  ;;  %v372_v15 = vshrl.u32 %v2245_v60, 16  ;;  %v493_v20 = vshrl.u32 %v2260_v9, 16  ;;  %v495_v21 = vshll.u32 %v2260_v9, 16  ;;  %v376_v23 = vrot.slane %v374_v16, 1  ;;  %v2214_v60 = vld [vmem:[%s3029_s10 + $0x38] sm:$0xe] }
  0x80   : > { %1905 = vmatprep.subr.bf16.mxu0 %v2746_v25  ;;  %v369_v22 = vrot.slane %v367_v13, 1  ;;  %v500_v24 = vshrl.u32 %v2261_v11, 16  ;;  %v502_v25 = vshll.u32 %v2261_v11, 16  ;;  %v548_v27 = vrot.slane %v2268_v18, 1  ;;  %v2780_v13 = vld [vmem:[#allocation2 + $0x1a4] ss:$8 sps:$4 sm:$0xff]  }
  0x81   : > { %v497_v29 = vrot.slane %v495_v21, 1  ;;  %v377_v33 = vor.u32 %v376_v23, %v372_v15  ;;  %v2783_v15 = vld [vmem:[#allocation2 + $0x3a4] ss:$8 sps:$4 sm:$0xff]  }
  0x82   : > { %1760 = vmatpush1.bf16.msra.mxu1 %v2741_v37  ;;  %v370_v32 = vor.u32 %v369_v22, %v365_v12  ;;  %v504_v34 = vrot.slane %v502_v25, 1  ;;  %v2311_v37 = vcombine.low %v548_v27, %v549_v28  ;;  %v2778_v27 = vld [vmem:[#allocation2 + $0x1a0] ss:$8 sps:$4 sm:$0xff]  }
  0x83   : > { %1906 = vmatpush1.bf16.msra.mxu0 %v2744_v41  ;;  %1761 = vmatprep.subr.bf16.mxu1 %v2749_v42  ;;  %v498_v38 = vor.u32 %v497_v29, %v493_v20  ;;  %v2306_v42 = vcombine.low %v3092_v50, %v3095_v51  ;;  %v2246_v50 = vcombine.low %v3124_v44, %v3130_v46 }
  0x84   : > { %1907 = vmatprep.subr.bf16.mxu0 %v2752_v45  ;;  %v2307_v41 = vcombine.low %v370_v32, %v377_v33  ;;  %v505_v43 = vor.u32 %v504_v34, %v500_v24  ;;  %v3127_v45 = vld [vmem:[%s3029_s10 + $0x38] sm:$0xf]  ;;  %1874 = vmatprep.mubr.bf16.mxu0 %v2311_v37  ;;  %v2786_v32 = vld [vmem:[#allocation2 + $0x1b4] ss:$8 sps:$4 sm:$0xff]  }
  0x85   : > { %v2247_v51 = vcombine.low %v3127_v45, %v3133_v47  ;;  %v379_v8 = vshrl.u32 %v2246_v50, 16  ;;  %v381_v9 = vshll.u32 %v2246_v50, 16 }
  0x86   : > { %1762 = vmatpush1.bf16.msra.mxu1 %v2747_v52  ;;  %v3136_v52 = vld [vmem:[%s3029_s10 + $0x38] sm:$0xf]  ;;  %1728 = vmatprep.mubr.bf16.mxu1 %v2307_v41  ;;  %v2315_v41 = vcombine.low %v3124_v44, %v3127_v45  ;;  %v2799_v44 = vld [vmem:[#allocation2 + $0x1c4] ss:$8 sps:$4 sm:$0xff]  }
  0x87   : > { %1908 = vmatpush1.bf16.msra.mxu0 %v2750_v53  ;;  %1763 = vmatprep.subr.bf16.mxu1 %v2755_v56  ;;  %v2310_v53 = vcombine.low %v498_v38, %v505_v43  ;;  %v2206_v56 = vld [vmem:[%s3029_s10 + $0x3c] sm:$0x1]  ;;  %v386_v11 = vshrl.u32 %v2247_v51, 16  ;;  %v388_v12 = vshll.u32 %v2247_v51, 16  ;;  %v383_v20 = vrot.slane %v381_v9, 1 }
  0x88   : > { %1909 = vmatprep.subr.bf16.mxu0 %v2758_v57  ;;  %v2207_v57 = vld [vmem:[%s3029_s10 + $0x44] sm:$0x1]  ;;  %v2262_v63 = vcombine.low %v3136_v52, %v2206_v56  ;;  %1729 = vmatmul.mubr.bf16.gmra.mrb[8].mxu1 %v2306_v42  ;;  %v2270_v16 = vcombine.low %v2214_v60, %v2206_v56  ;;  %v3152_v38 = vld [vmem:[%s3029_s10 + $0x10] sm:$0xf]  ;;  %v3160_v42 = vld [vmem:[%s3029_s10 + $0x14] sm:$0x1]  ;;  %v2291_v51 = vcombine.low %v3044_v2, %v3051_v7 }
  0x89   : > { %v2263_v0 = vcombine.low %v3143_v54, %v2207_v57  ;;  %1875 = vmatmul.mubr.bf16.gmra.mrb[8].mxu0 %v2310_v53  ;;  %v390_v21 = vrot.slane %v388_v12, 1  ;;  %v384_v28 = vor.u32 %v383_v20, %v379_v8  ;;  %v3163_v43 = vld [vmem:[%s3029_s10 + $0x1c] sm:$0x1]  ;;  %v2787_v53 = vld [vmem:[#allocation2 + $0x3b0] ss:$8 sps:$4 sm:$0xff]   ;;  %v2272_v56 = vcombine.low %v3152_v38, %v3160_v42 }
  0x8a   : > { %1764 = vmatpush1.bf16.msra.mxu1 %v2753_v17  ;;  %v2271_v17 = vcombine.low %v2215_v62, %v2207_v57  ;;  %v507_v18 = vshrl.u32 %v2262_v63, 16  ;;  %v509_v19 = vshll.u32 %v2262_v63, 16  ;;  %v550_v24 = vrot.slane %v2270_v16, 1  ;;  %v2802_v45 = vld [vmem:[#allocation2 + $0x3c4] ss:$8 sps:$4 sm:$0xff]  }
  0x8b   : > { %1910 = vmatpush1.bf16.msra.mxu0 %v2756_v26  ;;  %1765 = vmatprep.subr.bf16.mxu1 %v2761_v30  ;;  %v514_v22 = vshrl.u32 %v2263_v0, 16  ;;  %v516_v23 = vshll.u32 %v2263_v0, 16  ;;  %v391_v29 = vor.u32 %v390_v21, %v386_v11  ;;  %v2797_v7 = vld [vmem:[#allocation2 + $0x1c0] ss:$8 sps:$4 sm:$0xff]   ;;  %v3178_v11 = vld [vmem:[%s3029_s10 + $0x24] sm:$0x1] }
  0x8c   : > { %1911 = vmatprep.subr.bf16.mxu0 %v2764_v31  ;;  %v551_v25 = vrot.slane %v2271_v17, 1  ;;  %v511_v26 = vrot.slane %v509_v19, 1  ;;  %v2781_v31 = vld [vmem:[#allocation2 + $0x3a0] ss:$8 sps:$4 sm:$0xff]   ;;  %v3181_v12 = vld [vmem:[%s3029_s10 + $0x2c] sm:$0x1] }
  0x8d   : > { %v518_v30 = vrot.slane %v516_v23, 1  ;;  %v3172_v0 = vld [vmem:[%s3029_s10 + $0x20] sm:$0xf]  ;;  %v3175_v8 = vld [vmem:[%s3029_s10 + $0x28] sm:$0xf] }
  0x8e   : > { %1766 = vmatpush1.bf16.msra.mxu1 %v2759_v35  ;;  %v2320_v33 = vcombine.low %v550_v24, %v551_v25  ;;  %v512_v34 = vor.u32 %v511_v26, %v507_v18  ;;  %v2789_v35 = vld [vmem:[#allocation2 + $0x3b4] ss:$8 sps:$4 sm:$0xff]   ;;  %v2800_v9 = vld [vmem:[#allocation2 + $0x3c0] ss:$8 sps:$4 sm:$0xff]   ;;  %v2274_v18 = vcombine.low %v3172_v0, %v3178_v11  ;;  %v2275_v19 = vcombine.low %v3175_v8, %v3181_v12  ;;  %v2803_v20 = vld [vmem:[#allocation2 + $0x1d0] ss:$8 sps:$4 sm:$0xff]  }
  0x8f   : > { %1912 = vmatpush1.bf16.msra.mxu0 %v2762_v36  ;;  %1767 = vmatprep.subr.bf16.mxu1 %v2767_v39  ;;  %v2316_v36 = vcombine.low %v384_v28, %v391_v29  ;;  %v519_v37 = vor.u32 %v518_v30, %v514_v22  ;;  %v3155_v39 = vld [vmem:[%s3029_s10 + $0x18] sm:$0xf]  ;;  %v2818_v23 = vld [vmem:[#allocation2 + $0x1e4] ss:$8 sps:$4 sm:$0xff]   ;;  %v3188_v26 = vld [vmem:[%s3029_s10 + $0x30] sm:$0xf]  ;;  %v2303_v5 = vcombine.low %v3172_v0, %v3175_v8 }
  0x90   : > { %1913 = vmatprep.subr.bf16.mxu0 %v2770_v40  ;;  %v2784_v40 = vld [vmem:[#allocation2 + $0x1b0] ss:$8 sps:$4 sm:$0xff]   ;;  %1884 = vmatprep.mubr.bf16.mxu0 %v2320_v33  ;;  %v2273_v57 = vcombine.low %v3155_v39, %v3163_v43  ;;  %v2821_v24 = vld [vmem:[#allocation2 + $0x3e4] ss:$8 sps:$4 sm:$0xff]   ;;  %v609_v25 = vshll.u32 %v2274_v18, 16  ;;  %v616_v28 = vshll.u32 %v2275_v19, 16 }
  0x91   : > { %1738 = vmatprep.mubr.bf16.mxu1 %v2316_v36  ;;  %v2319_v50 = vcombine.low %v512_v34, %v519_v37  ;;  %v2806_v22 = vld [vmem:[#allocation2 + $0x3d0] ss:$8 sps:$4 sm:$0xff]   ;;  %v3194_v29 = vld [vmem:[%s3029_s10 + $0x34] sm:$0x1]  ;;  %v3197_v30 = vld [vmem:[%s3029_s10 + $0x3c] sm:$0x1] }
  0x92   : > { %1768 = vmatpush1.bf16.msra.mxu1 %v2765_v58  ;;  %v593_v58 = vshrl.u32 %v2272_v56, 16  ;;  %v600_v60 = vshrl.u32 %v2273_v57, 16  ;;  %v602_v2 = vshll.u32 %v2273_v57, 16  ;;  %v2824_v33 = vld [vmem:[#allocation2 + $0x1f4] ss:$8 sps:$4 sm:$0xff]   ;;  %v607_v37 = vshrl.u32 %v2274_v18, 16 }
  0x93   : > { %1914 = vmatpush1.bf16.msra.mxu0 %v2768_v59  ;;  %1769 = vmatprep.subr.bf16.mxu1 %v2780_v13  ;;  %v595_v59 = vshll.u32 %v2272_v56, 16  ;;  %v2805_v13 = vld [vmem:[#allocation2 + $0x1d4] ss:$8 sps:$4 sm:$0xff]   ;;  %v234_v56 = vld [vmem:[%s3029_s10 + $0x10] sm:$0xe] }
  0x94   : > { %1915 = vmatprep.subr.bf16.mxu0 %v2783_v15  ;;  %1739 = vmatmul.mubr.bf16.gmra.mrb[12].mxu1 %v2315_v41  ;;  %v604_v63 = vrot.slane %v602_v2, 1  ;;  %v2808_v15 = vld [vmem:[#allocation2 + $0x3d4] ss:$8 sps:$4 sm:$0xff]   ;;  %v614_v41 = vshrl.u32 %v2275_v19, 16  ;;  %v235_v57 = vld [vmem:[%s3029_s10 + $0x18] sm:$0xe] }
  0x95   : > { %1885 = vmatmul.mubr.bf16.gmra.mrb[12].mxu0 %v2319_v50  ;;  %1781 = vmatprep.mubr.bf16.mxu1 %v2291_v51  ;;  %v597_v62 = vrot.slane %v595_v59, 1  ;;  %v2827_v34 = vld [vmem:[#allocation2 + $0x3f4] ss:$8 sps:$4 sm:$0xff]   ;;  %v2822_v50 = vld [vmem:[#allocation2 + $0x1f0] ss:$8 sps:$4 sm:$0xff]  }
  0x96   : > { %1770 = vmatpush1.bf16.msra.mxu1 %v2778_v27  ;;  %v605_v17 = vor.u32 %v604_v63, %v600_v60  ;;  %v3191_v27 = vld [vmem:[%s3029_s10 + $0x38] sm:$0xf]  ;;  %v3206_v2 = vld [vmem:[%s3029_s10 + $0x40] sm:$0xf]  ;;  %v2251_v63 = vcombine.low %v235_v57, %v3073_v3  ;;  %v2300_v3 = vcombine.low %v3076_v4, %v3083_v10  ;;  %v2848_v4 = vld [vmem:[#allocation2 + $0x424] ss:$8 sps:$4 sm:$0xff]  }
  0x97   : > { %1916 = vmatpush1.bf16.msra.mxu0 %v2781_v31  ;;  %1771 = vmatprep.subr.bf16.mxu1 %v2786_v32  ;;  %v598_v16 = vor.u32 %v597_v62, %v593_v58  ;;  %v2816_v31 = vld [vmem:[#allocation2 + $0x1e0] ss:$8 sps:$4 sm:$0xff]   ;;  %v2277_v36 = vcombine.low %v3191_v27, %v3197_v30  ;;  %v2825_v51 = vld [vmem:[#allocation2 + $0x3f0] ss:$8 sps:$4 sm:$0xff]   ;;  %v2250_v62 = vcombine.low %v234_v56, %v3070_v1  ;;  %v2862_v57 = vld [vmem:[#allocation2 + $0x444] ss:$8 sps:$4 sm:$0xff]  }
  0x98   : > { %1917 = vmatprep.subr.bf16.mxu0 %v2789_v35  ;;  %v2819_v32 = vld [vmem:[#allocation2 + $0x3e0] ss:$8 sps:$4 sm:$0xff]   ;;  %v2276_v35 = vcombine.low %v3188_v26, %v3194_v29  ;;  %v2849_v8 = vld [vmem:[#allocation2 + $0x430] ss:$8 sps:$4 sm:$0xff]  }
  0x99   : > { %v2295_v21 = vcombine.low %v598_v16, %v605_v17  ;;  %v630_v58 = vshll.u32 %v2277_v36, 16  ;;  %v2834_v16 = vld [vmem:[#allocation2 + $0x400] ss:$8 sps:$4 sm:$0xff]   ;;  %v2839_v17 = vld [vmem:[#allocation2 + $0x414] ss:$8 sps:$4 sm:$0xff]  }
  0x9a   : > { %1772 = vmatpush1.bf16.msra.mxu1 %v2784_v40  ;;  %v611_v40 = vrot.slane %v609_v25, 1  ;;  %v621_v18 = vshrl.u32 %v2276_v35, 16  ;;  %v236_v25 = vld [vmem:[%s3029_s10 + $0x20] sm:$0xe]  ;;  %v239_v56 = vld [vmem:[%s3029_s10 + $0x38] sm:$0xe] }
  0x9b   : > { %1918 = vmatpush1.bf16.msra.mxu0 %v2787_v53  ;;  %1773 = vmatprep.subr.bf16.mxu1 %v2799_v44  ;;  %v618_v53 = vrot.slane %v616_v28, 1  ;;  %v2836_v44 = vld [vmem:[#allocation2 + $0x404] ss:$8 sps:$4 sm:$0xff]   ;;  %v632_v1 = vrot.slane %v630_v58, 1  ;;  %v237_v28 = vld [vmem:[%s3029_s10 + $0x28] sm:$0xe]  ;;  %v2252_v6 = vcombine.low %v236_v25, %v3100_v48 }
  0x9c   : > { %1919 = vmatprep.subr.bf16.mxu0 %v2802_v45  ;;  %1927 = vmatprep.mubr.bf16.mxu0 %v2295_v21  ;;  %v623_v45 = vshll.u32 %v2276_v35, 16  ;;  %v612_v59 = vor.u32 %v611_v40, %v607_v37  ;;  %v2846_v35 = vld [vmem:[#allocation2 + $0x420] ss:$8 sps:$4 sm:$0xff]   ;;  %v2309_v37 = vcombine.low %v3106_v55, %v3113_v61  ;;  %v2941_v25 = vmov 0  }
  0x9d   : > { %v619_v60 = vor.u32 %v618_v53, %v614_v41  ;;  %v420_v48 = vrot.slane %v2252_v6, 1 }
  0x9e   : > { %1774 = vmatpush1.bf16.msra.mxu1 %v2797_v7  ;;  %v2294_v7 = vcombine.low %v3152_v38, %v3155_v39  ;;  %v625_v38 = vrot.slane %v623_v45, 1  ;;  %v628_v39 = vshrl.u32 %v2277_v36, 16  ;;  %v2851_v36 = vld [vmem:[#allocation2 + $0x434] ss:$8 sps:$4 sm:$0xff]   ;;  %v2312_v45 = vcombine.low %v3188_v26, %v3191_v27 }
  0x9f   : > { %1920 = vmatpush1.bf16.msra.mxu0 %v2800_v9  ;;  %1775 = vmatprep.subr.bf16.mxu1 %v2805_v13  ;;  %v3213_v9 = vld [vmem:[%s3029_s10 + $0x48] sm:$0xf]  ;;  %v3216_v13 = vld [vmem:[%s3029_s10 + $0x44] sm:$0x1]  ;;  %v2304_v19 = vcombine.low %v612_v59, %v619_v60  ;;  %v2255_v59 = vcombine.low %v239_v56, %v3133_v47  ;;  %v2863_v47 = vld [vmem:[#allocation2 + $0x450] ss:$8 sps:$4 sm:$0xff]  }
  0xa0   : > { %1921 = vmatprep.subr.bf16.mxu0 %v2808_v15  ;;  %v3219_v15 = vld [vmem:[%s3029_s10 + $0x4c] sm:$0x1]  ;;  %v626_v10 = vor.u32 %v625_v38, %v621_v18  ;;  %v2860_v60 = vld [vmem:[#allocation2 + $0x440] ss:$8 sps:$4 sm:$0xff]   ;;  %v2236_v18 = vld [vmem:[%s3029_s10 + $0x30] sm:$0xe] }
  0xa1   : > { %v2279_v21 = vcombine.low %v3213_v9, %v3219_v15  ;;  %v2237_v38 = vld [vmem:[%s3029_s10 + $0x38] sm:$0xe] }
  0xa2   : > { %1776 = vmatpush1.bf16.msra.mxu1 %v2803_v20  ;;  %v2278_v20 = vcombine.low %v3206_v2, %v3216_v13 }
  0xa3   : > { %1922 = vmatpush1.bf16.msra.mxu0 %v2806_v22  ;;  %1777 = vmatprep.subr.bf16.mxu1 %v2818_v23  ;;  %v418_v22 = vrot.slane %v2250_v62, 1  ;;  %v419_v23 = vrot.slane %v2251_v63, 1  ;;  %v2232_v62 = vld [vmem:[%s3029_s10 + $0x10] sm:$0xe]  ;;  %v2233_v63 = vld [vmem:[%s3029_s10 + $0x18] sm:$0xe] }
  0xa4   : > { %1923 = vmatprep.subr.bf16.mxu0 %v2821_v24  ;;  %v2837_v24 = vld [vmem:[#allocation2 + $0x410] ss:$8 sps:$4 sm:$0xff]   ;;  %v635_v41 = vshrl.u32 %v2278_v20, 16  ;;  %v2280_v27 = vcombine.low %v2232_v62, %v3160_v42  ;;  %v2872_v42 = vld [vmem:[#allocation2 + $0x460] ss:$8 sps:$4 sm:$0xff]  }
  0xa6   : > { %1778 = vmatpush1.bf16.msra.mxu1 %v2816_v31  ;;  %v633_v31 = vor.u32 %v632_v1, %v628_v39  ;;  %v2874_v39 = vld [vmem:[#allocation2 + $0x464] ss:$8 sps:$4 sm:$0xff]   ;;  %v2281_v1 = vcombine.low %v2233_v63, %v3163_v43  ;;  %v2877_v43 = vld [vmem:[#allocation2 + $0x474] ss:$8 sps:$4 sm:$0xff]  }
  0xa7   : > { %1924 = vmatpush1.bf16.msra.mxu0 %v2819_v32  ;;  %1779 = vmatprep.subr.bf16.mxu1 %v2824_v33  ;;  %v637_v32 = vshll.u32 %v2278_v20, 16  ;;  %v644_v33 = vshll.u32 %v2279_v21, 16  ;;  %v672_v20 = vrot.slane %v2280_v27, 1 }
  0xa8   : > { %1925 = vmatprep.subr.bf16.mxu0 %v2827_v34  ;;  %v2299_v34 = vcombine.low %v418_v22, %v419_v23  ;;  %v2313_v40 = vcombine.low %v626_v10, %v633_v31  ;;  %v2875_v22 = vld [vmem:[#allocation2 + $0x470] ss:$8 sps:$4 sm:$0xff]   ;;  %v2234_v23 = vld [vmem:[%s3029_s10 + $0x20] sm:$0xe] }
  0xa9   : > { %v639_v53 = vrot.slane %v637_v32, 1  ;;  %v646_v0 = vrot.slane %v644_v33, 1  ;;  %v2282_v10 = vcombine.low %v2234_v23, %v3178_v11 }
  0xaa   : > { %1780 = vmatpush1.bf16.msra.mxu1 %v2822_v50  ;;  %v642_v50 = vshrl.u32 %v2279_v21, 16 }
  0xab   : > { %1926 = vmatpush1.bf16.msra.mxu0 %v2825_v51  ;;  %2471 = vmatprep.subr.bf16.mxu1 %v2836_v44  ;;  %v238_v51 = vld [vmem:[%s3029_s10 + $0x30] sm:$0xe]  ;;  %v640_v55 = vor.u32 %v639_v53, %v635_v41 }
  0xac   : > { %1968 = vmatprep.subr.bf16.mxu0 %v2836_v44  ;;  %v647_v61 = vor.u32 %v646_v0, %v642_v50  ;;  %v2254_v58 = vcombine.low %v238_v51, %v3130_v46  ;;  %v423_v46 = vrot.slane %v2255_v59, 1 }
  0xad   : > { %1782 = vmatmul.mubr.bf16.vlgmr.msra.gmra.mrb[0].mxu1 %v2290_v14  ;;  %v2253_v14 = vcombine.low %v237_v28, %v3103_v49 }
  0xae   : > { %1928 = vmatmul.mubr.bf16.vlgmr.msra.gmra.mrb[0].mxu0 %v2294_v7  ;;  %2479 = vmatpush1.bf16.msra.mxu1 %v2834_v16  ;;  %v2865_v7 = vld [vmem:[#allocation2 + $0x454] ss:$8 sps:$4 sm:$0xff]   ;;  %v422_v26 = vrot.slane %v2254_v58, 1 }
  0xaf   : > { %1969 = vmatpush1.bf16.msra.mxu0 %v2834_v16  ;;  %2472 = vmatprep.subr.bf16.mxu1 %v2839_v17  ;;  %v421_v49 = vrot.slane %v2253_v14, 1  ;;  %v2318_v16 = vcombine.low %v3136_v52, %v3143_v54  ;;  %v2285_v52 = vcombine.low %v2237_v38, %v3197_v30 }
  0xb0   : > { %1970 = vmatprep.subr.bf16.mxu0 %v2839_v17  ;;  %1791 = vmatprep.mubr.bf16.mxu1 %v2300_v3  ;;  %v2322_v17 = vcombine.low %v640_v55, %v647_v61  ;;  %v2284_v3 = vcombine.low %v2236_v18, %v3194_v29  ;;  %v2317_v54 = vcombine.low %v422_v26, %v423_v46  ;;  %v673_v29 = vrot.slane %v2281_v1, 1 }
  0xb1   : > { %1937 = vmatprep.mubr.bf16.mxu0 %v2304_v19  ;;  %v2308_v44 = vcombine.low %v420_v48, %v421_v49  ;;  %v2321_v19 = vcombine.low %v3206_v2, %v3213_v9  ;;  %v677_v30 = vrot.slane %v2285_v52, 1  ;;  %v2235_v2 = vld [vmem:[%s3029_s10 + $0x28] sm:$0xe]  ;;  %v2238_v9 = vld [vmem:[%s3029_s10 + $0x40] sm:$0xe] }
  0xb2   : > { %2480 = vmatpush1.bf16.msra.mxu1 %v2837_v24  ;;  %v676_v21 = vrot.slane %v2284_v3, 1  ;;  %v2296_v28 = vcombine.low %v672_v20, %v673_v29  ;;  %v2283_v31 = vcombine.low %v2235_v2, %v3181_v12  ;;  %v2286_v32 = vcombine.low %v2238_v9, %v3216_v13  ;;  %v872_v49 = vld [vmem:[%s3332_s2] sm:$0x3] }
  0xb3   : > { %1971 = vmatpush1.bf16.msra.mxu0 %v2837_v24  ;;  %2473 = vmatprep.subr.bf16.mxu1 %v2848_v4  ;;  %v2239_v24 = vld [vmem:[%s3029_s10 + $0x48] sm:$0xe]  ;;  %v874_v13 = vlaneseq }
  0xb4   : > { %1972 = vmatprep.subr.bf16.mxu0 %v2848_v4  ;;  %v2314_v4 = vcombine.low %v676_v21, %v677_v30  ;;  %v2287_v33 = vcombine.low %v2239_v24, %v3219_v15  ;;  %v678_v6 = vrot.slane %v2286_v32, 1 }
  0xb5   : > { %1792 = vmatmul.mubr.bf16.gmra.mrb[4].mxu1 %v2299_v34  ;;  %v674_v34 = vrot.slane %v2282_v10, 1  ;;  %v875_v15 = vshrl.u32 %v874_v13, 7 }
  0xb6   : > { %1938 = vmatmul.mubr.bf16.gmra.mrb[4].mxu0 %v2303_v5  ;;  %2481 = vmatpush1.bf16.msra.mxu1 %v2846_v35  ;;  %v675_v5 = vrot.slane %v2283_v31, 1  ;;  %v679_v14 = vrot.slane %v2287_v33, 1 }
  0xb7   : > { %1973 = vmatpush1.bf16.msra.mxu0 %v2846_v35  ;;  %2474 = vmatprep.subr.bf16.mxu1 %v2851_v36  ;;  %v876_v0 = vsub.s32 0, %v875_v15 }
  0xb8   : > { %1974 = vmatprep.subr.bf16.mxu0 %v2851_v36  ;;  %1801 = vmatprep.mubr.bf16.mxu1 %v2309_v37  ;;  %v2305_v35 = vcombine.low %v674_v34, %v675_v5  ;;  %v2323_v36 = vcombine.low %v678_v6, %v679_v14 }
  0xb9   : > { %1947 = vmatprep.mubr.bf16.mxu0 %v2313_v40  ;;  %v3275_v51 = vrot.slane %v872_v49, %v876_v0 }
  0xba   : > { %2482 = vmatpush1.bf16.msra.mxu1 %v2849_v8 }
  0xbb   : > { %1975 = vmatpush1.bf16.msra.mxu0 %v2849_v8  ;;  %2475 = vmatprep.subr.bf16.mxu1 %v2862_v57  ;;  %v880_v8 = vsub.s32 1, %v875_v15 }
  0xbc   : > { %1976 = vmatprep.subr.bf16.mxu0 %v2862_v57 }
  0xbd   : > { %1802 = vmatmul.mubr.bf16.gmra.mrb[8].mxu1 %v2308_v44  ;;  %v3277_v56 = vrot.slane %v872_v49, %v880_v8 }
  0xbe   : > { %1948 = vmatmul.mubr.bf16.gmra.mrb[8].mxu0 %v2312_v45  ;;  %2483 = vmatpush1.bf16.msra.mxu1 %v2860_v60 }
  0xbf   : > { %1977 = vmatpush1.bf16.msra.mxu0 %v2860_v60  ;;  %2476 = vmatprep.subr.bf16.mxu1 %v2865_v7 }
  0xc0   : > { %1978 = vmatprep.subr.bf16.mxu0 %v2865_v7  ;;  %1811 = vmatprep.mubr.bf16.mxu1 %v2318_v16 }
  0xc1   : > { %1957 = vmatprep.mubr.bf16.mxu0 %v2322_v17 }
  0xc2   : > { %2484 = vmatpush1.bf16.msra.mxu1 %v2863_v47 }
  0xc3   : > { %1979 = vmatpush1.bf16.msra.mxu0 %v2863_v47  ;;  %2477 = vmatprep.subr.bf16.mxu1 %v2874_v39 }
  0xc4   : > { %1980 = vmatprep.subr.bf16.mxu0 %v2874_v39 }
  0xc5   : > { %1812 = vmatmul.mubr.bf16.gmra.mrb[12].mxu1 %v2317_v54 }
  0xc6   : > { %1958 = vmatmul.mubr.bf16.gmra.mrb[12].mxu0 %v2321_v19  ;;  %2485 = vmatpush1.bf16.msra.mxu1 %v2872_v42 }
  0xc7   : > { %1981 = vmatpush1.bf16.msra.mxu0 %v2872_v42  ;;  %2478 = vmatprep.subr.bf16.mxu1 %v2877_v43 }
  0xc8   : > { %1982 = vmatprep.subr.bf16.mxu0 %v2877_v43  ;;  %2000 = vmatprep.mubr.bf16.mxu0 %v2941_v25 }
  0xc9   : > { %2020 = vmatprep.mubr.bf16.mxu1 %v2941_v25 }
  0xca   : > { %2486 = vmatpush1.bf16.msra.mxu1 %v2875_v22 }
  0xcb   : > { %1983 = vmatpush1.bf16.msra.mxu0 %v2875_v22 }
  0xcd   : > { %2021 = vmatmul.mubr.bf16.vlgmr.msra.gmra.mrb[16].mxu1 %v2314_v4 }
  0xce   : > { %2001 = vmatmul.mubr.bf16.vlgmr.msra.gmra.mrb[0].mxu0 %v2296_v28  ;;  %2030 = vmatprep.mubr.bf16.mxu1 %v2941_v25 }
  0xcf   : > { %2010 = vmatprep.mubr.bf16.mxu0 %v2941_v25 }
  0xd5   : > { %2031 = vmatmul.mubr.bf16.gmra.mrb[20].mxu1 %v2323_v36 }
  0xd6   : > { %2011 = vmatmul.mubr.bf16.gmra.mrb[4].mxu0 %v2305_v35 }
 0x180   : > { %v1783_v11 = vpop.f32.mrb[0].mxu1 }
 0x181   : > { %v1785_v12 = vpop.f32.mrb[1].mxu1  ;;  %v2487_v23 = vadd.f32 %v1783_v11, %v3275_v51 }
 0x182   : > { %v1787_v37 = vpop.f32.mrb[2].mxu1  ;;  %v2489_v2 = vadd.f32 %v1785_v12, %v3277_v56 }
 0x183   : > { %v1789_v40 = vpop.f32.mrb[3].mxu1  ;;  %v2491_v25 = vadd.f32 %v1787_v37, %v3275_v51 }
 0x184   : > { %v2493_v32 = vadd.f32 %v1789_v40, %v3277_v56 }
 0x188   : > { %v3264_v41 = vpop.f32.mrb[4].mxu1 }
 0x189   : > { %v3266_v53 = vpop.f32.mrb[5].mxu1 }
 0x18a   : > { %v3268_v50 = vpop.f32.mrb[6].mxu1 }
 0x18b   : > { %v3270_v48 = vpop.f32.mrb[7].mxu1 }
 0x190   : > { %v1803_v57 = vpop.f32.mrb[8].mxu1 }
 0x191   : > { %v1949_v55 = vpop.f32.mrb[8].mxu0  ;;  %v2503_v61 = vadd.f32 %v1803_v57, %v3275_v51  ;;  %v1805_v44 = vpop.f32.mrb[9].mxu1 }
 0x192   : > { %v1951_v45 = vpop.f32.mrb[9].mxu0  ;;  %v2506_v58 = vadd.f32 %v1805_v44, %v3277_v56  ;;  %v1807_v59 = vpop.f32.mrb[10].mxu1  ;;  %v2497_v44 = vadd.f32 %v3266_v53, %v3277_v56 }
 0x193   : > { %v1953_v60 = vpop.f32.mrb[10].mxu0  ;;  %v2504_v7 = vadd.f32 %v2503_v61, %v1949_v55  ;;  %v2509_v62 = vadd.f32 %v1807_v59, %v3275_v51  ;;  %v1809_v63 = vpop.f32.mrb[11].mxu1  ;;  %v2495_v61 = vadd.f32 %v3264_v41, %v3275_v51  ;;  %v2499_v59 = vadd.f32 %v3268_v50, %v3275_v51 }
 0x194   : > { %v1955_v16 = vpop.f32.mrb[11].mxu0  ;;  %v2507_v17 = vadd.f32 %v2506_v58, %v1951_v45  ;;  %v2512_v18 = vadd.f32 %v1809_v63, %v3277_v56  ;;  %v2501_v41 = vadd.f32 %v3270_v48, %v3277_v56 }
 0x195   : > { %v2510_v38 = vadd.f32 %v2509_v62, %v1953_v60 }
 0x196   : > { %v2513_v26 = vadd.f32 %v2512_v18, %v1955_v16 }
 0x198   : > { %v1813_v46 = vpop.f32.mrb[12].mxu1 }
 0x199   : > { %v1959_v47 = vpop.f32.mrb[12].mxu0  ;;  %v2515_v27 = vadd.f32 %v1813_v46, %v3275_v51  ;;  %v1815_v39 = vpop.f32.mrb[13].mxu1 }
 0x19a   : > { %v1961_v1 = vpop.f32.mrb[13].mxu0  ;;  %v2518_v3 = vadd.f32 %v1815_v39, %v3277_v56  ;;  %v1817_v52 = vpop.f32.mrb[14].mxu1 }
 0x19b   : > { %v1963_v54 = vpop.f32.mrb[14].mxu0  ;;  %v2516_v19 = vadd.f32 %v2515_v27, %v1959_v47  ;;  %v2521_v42 = vadd.f32 %v1817_v52, %v3275_v51  ;;  %v1819_v43 = vpop.f32.mrb[15].mxu1 }
 0x19c   : > { %v1965_v20 = vpop.f32.mrb[15].mxu0  ;;  %v2519_v29 = vadd.f32 %v2518_v3, %v1961_v1  ;;  %v2524_v21 = vadd.f32 %v1819_v43, %v3277_v56 }
 0x19d   : > { %v2522_v30 = vadd.f32 %v2521_v42, %v1963_v54 }
 0x19e   : > { %v2525_v22 = vadd.f32 %v2524_v21, %v1965_v20 }
 0x1a0   : > { %v2022_v24 = vpop.f32.mrb[16].mxu1 }
 0x1a1   : > { %v2002_v9 = vpop.f32.mrb[0].mxu0  ;;  %v2505_v4 = vadd.f32 %v2504_v7, %v2022_v24  ;;  %v2024_v31 = vpop.f32.mrb[17].mxu1 }
 0x1a2   : > { %v2488_v28 = vadd.f32 %v2487_v23, %v2002_v9  ;;  %v2004_v10 = vpop.f32.mrb[1].mxu0  ;;  %v2508_v34 = vadd.f32 %v2507_v17, %v2024_v31  ;;  %v2026_v6 = vpop.f32.mrb[18].mxu1 }
 0x1a3   : > { %v2490_v33 = vadd.f32 %v2489_v2, %v2004_v10  ;;  %v2006_v5 = vpop.f32.mrb[2].mxu0  ;;  %v2049_v35 = vmax.f32 %v2505_v4, 0.0  ;;  %v2511_v11 = vadd.f32 %v2510_v38, %v2026_v6  ;;  %v2028_v37 = vpop.f32.mrb[19].mxu1 }
 0x1a4   : > { %v2041_v14 = vmax.f32 %v2488_v28, 0.0  ;;  %v2492_v36 = vadd.f32 %v2491_v25, %v2006_v5  ;;  %v2008_v12 = vpop.f32.mrb[3].mxu0  ;;  %v2050_v40 = vmax.f32 %v2508_v34, 0.0  ;;  %v2514_v0 = vadd.f32 %v2513_v26, %v2028_v37 }
 0x1a5   : > { %v2042_v13 = vmax.f32 %v2490_v33, 0.0  ;;  %v2494_v15 = vadd.f32 %v2493_v32, %v2008_v12  ;;  %2065 = vst [vmem:[%s3295_s20 + $0x40] sm:$0xff] %v2049_v35  ;;  %v2051_v8 = vmax.f32 %v2511_v11, 0.0 }
 0x1a6   : > { %2057 = vst [vmem:[%s3295_s20] sm:$0xff] %v2041_v14  ;;  %v2043_v49 = vmax.f32 %v2492_v36, 0.0  ;;  %2066 = vst [vmem:[%s3295_s20 + $0x48] sm:$0xff] %v2050_v40  ;;  %v2052_v55 = vmax.f32 %v2514_v0, 0.0 }
 0x1a7   : > { %2058 = vst [vmem:[%s3295_s20 + $0x8] sm:$0xff] %v2042_v13  ;;  %v2044_v57 = vmax.f32 %v2494_v15, 0.0  ;;  %2067 = vst [vmem:[%s3295_s20 + $0x50] sm:$0xff] %v2051_v8 }
 0x1a8   : > { %2059 = vst [vmem:[%s3295_s20 + $0x10] sm:$0xff] %v2043_v49  ;;  %2068 = vst [vmem:[%s3295_s20 + $0x58] sm:$0xff] %v2052_v55  ;;  %v2032_v58 = vpop.f32.mrb[20].mxu1 }
 0x1a9   : > { %2060 = vst [vmem:[%s3295_s20 + $0x18] sm:$0xff] %v2044_v57  ;;  %v2012_v45 = vpop.f32.mrb[4].mxu0  ;;  %v2517_v7 = vadd.f32 %v2516_v19, %v2032_v58  ;;  %v2034_v63 = vpop.f32.mrb[21].mxu1 }
 0x1aa   : > { %v2496_v60 = vadd.f32 %v2495_v61, %v2012_v45  ;;  %v2014_v62 = vpop.f32.mrb[5].mxu0  ;;  %v2520_v17 = vadd.f32 %v2519_v29, %v2034_v63  ;;  %v2036_v53 = vpop.f32.mrb[22].mxu1 }
 0x1ab   : > { %v2498_v16 = vadd.f32 %v2497_v44, %v2014_v62  ;;  %v2016_v18 = vpop.f32.mrb[6].mxu0  ;;  %v2053_v26 = vmax.f32 %v2517_v7, 0.0  ;;  %v2523_v50 = vadd.f32 %v2522_v30, %v2036_v53  ;;  %v2038_v47 = vpop.f32.mrb[23].mxu1 }
 0x1ac   : > { %v2045_v38 = vmax.f32 %v2496_v60, 0.0  ;;  %v2500_v46 = vadd.f32 %v2499_v59, %v2016_v18  ;;  %v2018_v51 = vpop.f32.mrb[7].mxu0  ;;  %v2054_v39 = vmax.f32 %v2520_v17, 0.0  ;;  %v2526_v56 = vadd.f32 %v2525_v22, %v2038_v47 }
 0x1ad   : > { %v2046_v27 = vmax.f32 %v2498_v16, 0.0  ;;  %v2502_v48 = vadd.f32 %v2501_v41, %v2018_v51  ;;  %2069 = vst [vmem:[%s3295_s20 + $0x60] sm:$0xff] %v2053_v26  ;;  %v2055_v3 = vmax.f32 %v2523_v50, 0.0 }
 0x1ae   : > { %2061 = vst [vmem:[%s3295_s20 + $0x20] sm:$0xff] %v2045_v38  ;;  %v2047_v1 = vmax.f32 %v2500_v46, 0.0  ;;  %2070 = vst [vmem:[%s3295_s20 + $0x68] sm:$0xff] %v2054_v39  ;;  %v2056_v54 = vmax.f32 %v2526_v56, 0.0 }
 0x1af   : > { %2062 = vst [vmem:[%s3295_s20 + $0x28] sm:$0xff] %v2046_v27  ;;  %v2048_v52 = vmax.f32 %v2502_v48, 0.0  ;;  %2071 = vst [vmem:[%s3295_s20 + $0x70] sm:$0xff] %v2055_v3 }
 0x1b0   : > { %2063 = vst [vmem:[%s3295_s20 + $0x30] sm:$0xff] %v2047_v1  ;;  %2072 = vst [vmem:[%s3295_s20 + $0x78] sm:$0xff] %v2056_v54 }
 0x1b1   : > { %2064 = vst [vmem:[%s3295_s20 + $0x38] sm:$0xff] %v2048_v52 }
 0x1b2 PF: > { %s14_s14 = sadd.s32 1, %s2936_s14   ;;  %s3342_s12 = smov %s2932_s13 }
 0x1b3   : > { %p11_p4 = scmp.ge.s32.totalorder %s14_s14, 4   ;;  %s3343_s13 = smov %s3345_s16 }
 0x1b5   :  { %13 = sbr.rel (!%p11_p4) target bundleno = 2 (0x2), region = 70 }
 0x1bc   :  { %2105 = vsyncpa [#allocation3], 1 }
 0x1bd   :  { %2107 = vsyncpa [#allocation3 + $0x1], 1 }

</bundles_post_ra>
